<compile_context>
chip_gen: v5e
topology: v5e:2x2
jax: 0.10.0
libtpu: 0.0.40
codegen_flags: <defaults>
</compile_context>

<pallas_src>
import jax
import jax.numpy as jnp
from jax import lax
from jax.experimental import pallas as pl
from jax.experimental.pallas import tpu as pltpu

_EPS = 1e-12  # matches torch.nn.functional.normalize default eps


def _round_up(v: int, m: int) -> int:
    return ((v + m - 1) // m) * m


def _cos_sim_kernel(x_ref, w_ref, col_inv_ref, o_ref, row_inv_ref):
    j = pl.program_id(1)

    # Compute the per-row inverse L2 norms once per row tile (j == 0) and cache
    # them in VMEM scratch; they are reused for every class tile j.
    @pl.when(j == 0)
    def _():
        xf = x_ref[...].astype(jnp.float32)                       # (TM, nfeat)
        row_sumsq = jnp.sum(xf * xf, axis=1, keepdims=True)       # (TM, 1)
        # 1 / max(||row||, eps)  ==  rsqrt(max(sumsq, eps^2))
        row_inv_ref[...] = lax.rsqrt(jnp.maximum(row_sumsq, _EPS * _EPS))

    # Raw-operand matmul on the MXU with f32 accumulation (no f32 up-cast copy).
    acc = jnp.dot(x_ref[...], w_ref[...],
                  preferred_element_type=jnp.float32)             # (TM, TN)

    # Post-scale by row/column inverse norms (tiny (TM,TN) elementwise work).
    o_ref[...] = (acc * row_inv_ref[...] * col_inv_ref[...]).astype(o_ref.dtype)


def cos_sim(x: jax.Array, projection: jax.Array, *, tm: int = 256,
            tn: int = 512) -> jax.Array:
    """x: (N, nfeat); projection: (nfeat, nclass) -> cosine-sim logits (N, nclass)."""
    n, nfeat = x.shape
    nfeat_w, nclass = projection.shape
    assert nfeat == nfeat_w

    out_dtype = jnp.promote_types(x.dtype, projection.dtype)

    # Clamp tile sizes to the (padded) problem while keeping them (8,128)-legal
    # and lane-dense on the output.
    tm = max(8, min(tm, _round_up(n, 8)))
    tn = max(128, min(tn, _round_up(nclass, 128)))
    n_pad = _round_up(n, tm)
    c_pad = _round_up(nclass, tn)

    x_p = jnp.pad(x, ((0, n_pad - n), (0, 0))) if n_pad != n else x
    w_p = (jnp.pad(projection, ((0, 0), (0, c_pad - nclass)))
           if c_pad != nclass else projection)

    # Column inverse norms of the projection, computed once in a tiny prologue.
    # Padded columns get inv = 0 so padded logits are exactly 0 (sliced away).
    col_sumsq = jnp.sum(projection.astype(jnp.float32) ** 2, axis=0,
                        keepdims=True)                             # (1, nclass)
    col_inv = lax.rsqrt(jnp.maximum(col_sumsq, _EPS * _EPS))
    if c_pad != nclass:
        col_inv = jnp.pad(col_inv, ((0, 0), (0, c_pad - nclass)))

    grid = (n_pad // tm, c_pad // tn)

    out = pl.pallas_call(
        _cos_sim_kernel,
        out_shape=jax.ShapeDtypeStruct((n_pad, c_pad), out_dtype),
        grid_spec=pltpu.PrefetchScalarGridSpec(
            num_scalar_prefetch=0,
            grid=grid,
            in_specs=[
                pl.BlockSpec((tm, nfeat), lambda i, j: (i, 0)),   # x row tile
                pl.BlockSpec((nfeat, tn), lambda i, j: (0, j)),   # w col tile
                pl.BlockSpec((1, tn), lambda i, j: (0, j)),       # col inv norms
            ],
            out_specs=pl.BlockSpec((tm, tn), lambda i, j: (i, j)),
            scratch_shapes=[pltpu.VMEM((tm, 1), jnp.float32)],    # row inv cache
        ),
        compiler_params=pltpu.CompilerParams(
            # i ("parallel") can be megacore-sharded on v7x; j stays
            # "arbitrary" (sequential per core) so the pl.when(j==0) row-norm
            # cache is valid.
            dimension_semantics=("parallel", "arbitrary"),
        ),
    )(x_p, w_p, col_inv)

    return out[:n, :nclass]


def _reference(x, projection):
    x_n = x / jnp.maximum(jnp.linalg.norm(x, axis=1, keepdims=True), _EPS)
    w_n = projection / jnp.maximum(
        jnp.linalg.norm(projection, axis=0, keepdims=True), _EPS)
    return x_n @ w_n


if __name__ == "__main__":
    # Small shapes consistent with CosSim(nfeat, nclass): batch=8, nfeat=32, nclass=16
    batch, nfeat, nclass = 8, 32, 16

    key = jax.random.PRNGKey(0)
    kx, kp = jax.random.split(key)
    x = jax.random.normal(kx, (batch, nfeat), dtype=jnp.float32)
    # Deterministic "torch.randn(nfeat, nclass)" stand-in parameter.
    projection = jax.random.normal(kp, (nfeat, nclass), dtype=jnp.float32)

    logits = cos_sim(x, projection)
    jax.block_until_ready(logits)

    ref = _reference(x, projection)
    assert logits.shape == (batch, nclass)
    assert jnp.allclose(logits, ref, atol=1e-5, rtol=1e-5)

    print("KERNEL_OK")
</pallas_src>

<mosaic_0001>
module attributes {stable_mosaic.version = 11 : i64} {
  func.func @_cos_sim_kernel(%arg0: i32, %arg1: i32, %arg2: memref<8x32xf32, #tpu.memory_space<vmem>>, %arg3: memref<32x128xf32, #tpu.memory_space<vmem>>, %arg4: memref<1x128xf32, #tpu.memory_space<vmem>>, %arg5: memref<8x128xf32, #tpu.memory_space<vmem>>, %arg6: memref<8x1xf32, #tpu.memory_space<vmem>>) attributes {dimension_semantics = [#tpu.dimension_semantics<parallel>, #tpu.dimension_semantics<arbitrary>], iteration_bounds = array<i64: 1, 1>, scalar_prefetch = 0 : i64, scratch_operands = 1 : i64, tpu.core_type = #tpu.core_type<tc>, window_params = [{transform_indices = @transform_0, window_bounds = array<i64: 8, 32>}, {transform_indices = @transform_1, window_bounds = array<i64: 32, 128>}, {transform_indices = @transform_2, window_bounds = array<i64: 1, 128>}, {transform_indices = @transform_3, window_bounds = array<i64: 8, 128>}]} {
    %c0_i32 = arith.constant 0 : i32
    %0 = arith.cmpi eq, %arg1, %c0_i32 : i32
    %1 = arith.extui %0 : i1 to i32
    %c0_i32_0 = arith.constant 0 : i32
    %2 = arith.cmpi ne, %1, %c0_i32_0 : i32
    scf.if %2 {
      %c0_10 = arith.constant 0 : index
      %c0_11 = arith.constant 0 : index
      %13 = vector.load %arg2[%c0_10, %c0_11] : memref<8x32xf32, #tpu.memory_space<vmem>>, vector<8x32xf32>
      %14 = arith.mulf %13, %13 : vector<8x32xf32>
      %cst_12 = arith.constant dense<0.000000e+00> : vector<8xf32>
      %15 = vector.multi_reduction <add>, %14, %cst_12 [1] : vector<8x32xf32> to vector<8xf32>
      %16 = vector.shape_cast %15 : vector<8xf32> to vector<8x1xf32>
      %cst_13 = arith.constant 1.000000e-24 : f32
      %17 = vector.broadcast %cst_13 : f32 to vector<8x1xf32>
      %18 = arith.maximumf %16, %17 : vector<8x1xf32>
      %19 = math.rsqrt %18 : vector<8x1xf32>
      %c0_14 = arith.constant 0 : index
      %c0_15 = arith.constant 0 : index
      %20 = vector.load %arg6[%c0_14, %c0_15] : memref<8x1xf32, #tpu.memory_space<vmem>>, vector<8x1xf32>
      tpu.vector_store %arg6[%c0_14, %c0_15], %19 {strides = array<i32>} : memref<8x1xf32, #tpu.memory_space<vmem>>, vector<8x1xf32>,
    } else {
    }
    %c0 = arith.constant 0 : index
    %c0_1 = arith.constant 0 : index
    %3 = vector.load %arg2[%c0, %c0_1] : memref<8x32xf32, #tpu.memory_space<vmem>>, vector<8x32xf32>
    %c0_2 = arith.constant 0 : index
    %c0_3 = arith.constant 0 : index
    %4 = vector.load %arg3[%c0_2, %c0_3] : memref<32x128xf32, #tpu.memory_space<vmem>>, vector<32x128xf32>
    %cst = arith.constant dense<0.000000e+00> : vector<8x128xf32>
    %5 = tpu.matmul %3, %4, %cst {dimension_numbers = #tpu.dot_dimension_numbers<[1], [0], [0], [1], [0, 0, 1, 1], [], []>} : vector<8x32xf32>, vector<32x128xf32>, vector<8x128xf32> -> vector<8x128xf32>
    %c0_4 = arith.constant 0 : index
    %c0_5 = arith.constant 0 : index
    %6 = vector.load %arg6[%c0_4, %c0_5] : memref<8x1xf32, #tpu.memory_space<vmem>>, vector<8x1xf32>
    %7 = vector.broadcast %6 : vector<8x1xf32> to vector<8x128xf32>
    %8 = arith.mulf %5, %7 : vector<8x128xf32>
    %c0_6 = arith.constant 0 : index
    %c0_7 = arith.constant 0 : index
    %9 = vector.load %arg4[%c0_6, %c0_7] : memref<1x128xf32, #tpu.memory_space<vmem>>, vector<1x128xf32>
    %10 = vector.broadcast %9 : vector<1x128xf32> to vector<8x128xf32>
    %11 = arith.mulf %8, %10 : vector<8x128xf32>
    %c0_8 = arith.constant 0 : index
    %c0_9 = arith.constant 0 : index
    %12 = vector.load %arg5[%c0_8, %c0_9] : memref<8x128xf32, #tpu.memory_space<vmem>>, vector<8x128xf32>
    tpu.vector_store %arg5[%c0_8, %c0_9], %11 {strides = array<i32>} : memref<8x128xf32, #tpu.memory_space<vmem>>, vector<8x128xf32>,
    return
  }
  func.func @transform_0(%arg0: i32, %arg1: i32) -> (i32, i32) {
    %c0_i32 = arith.constant 0 : i32
    %c0_i32_0 = arith.constant 0 : i32
    return %arg0, %c0_i32 : i32, i32
  }
  func.func @transform_1(%arg0: i32, %arg1: i32) -> (i32, i32) {
    %c0_i32 = arith.constant 0 : i32
    %c0_i32_0 = arith.constant 0 : i32
    return %c0_i32, %arg1 : i32, i32
  }
  func.func @transform_2(%arg0: i32, %arg1: i32) -> (i32, i32) {
    %c0_i32 = arith.constant 0 : i32
    %c0_i32_0 = arith.constant 0 : i32
    return %c0_i32, %arg1 : i32, i32
  }
  func.func @transform_3(%arg0: i32, %arg1: i32) -> (i32, i32) {
    %c0_i32 = arith.constant 0 : i32
    return %arg0, %arg1 : i32, i32
  }
}

</mosaic_0001>

<bundles_post_ra>
// kernel: tpu_custom_call.1
= control target key start
LH: loop header
LB: loop body
LE: loop exit
PB: predicated region body
PF: predicated region fallthrough
CT: control target
= control target key end

     0   :  { %8 = vsyncpa [#allocation4], 0  ;;  %s255_s0 = inlined_call_operand.hbm [shape: f32[8,32], index: 0, kind: input, shape index: {}]   ;;  %s256_s1 = inlined_call_operand.hbm [shape: f32[32,128], index: 1, kind: input, shape index: {}]   ;;  %s257_s2 = inlined_call_operand.vmem [shape: f32[1,128], index: 2, kind: input, shape index: {}]   ;;  %s258_s3 = inlined_call_operand.hbm [shape: f32[8,128], index: 3, kind: output, shape index: {}]  }
   0x1   :  { %9 = vsyncpa [#allocation7], 0 }
   0x2   :  { %10 = vsyncpa [#allocation5], 0  ;;  %s16_s14 = sshll.u32 %s255_s0, 4  ;;  %s217_s15 = smov [#allocation3]   ;;  %s17_s14 = int_to_ptr.hbm [resolvable:$true] %s16_s14 }
   0x3   :  { %s18_s16 = sshll.u32 %s217_s15, 4  ;;  %s26_s19 = sshll.u32 %s256_s1, 4  ;;  %s19_s16 = int_to_ptr.vmem [resolvable:$true] %s18_s16  ;;  %s27_s19 = int_to_ptr.hbm [resolvable:$true] %s26_s19 }
   0x4   :  { %21 = dma.hbm_to_vmem [thread:$0]  %s17_s14, 128, %s19_s16, [#allocation4]  }
   0x5   :  { %s218_s20 = smov [#allocation6]   ;;  %s219_s22 = smov 128  }
   0x6   :  { %s28_s21 = sshll.u32 %s218_s20, 4  ;;  %s220_s23 = smov 8   ;;  %s29_s21 = int_to_ptr.vmem [resolvable:$true] %s28_s21 }
   0x7   :  { %34 = dma.hbm_to_vmem [thread:$0]  %s27_s19, 512, %s29_s21, [#allocation7], %s219_s22, %s219_s22, %s220_s23  }
   0x8   :  { %211 = dma.done.wait [#allocation4], 128  }
   0x9   :  { %212 = vsyncadd [#allocation4], 4294967168 }
   0xa   :  { %213 = dma.done.wait [#allocation7], 512  }
   0xb   :  { %214 = vsyncadd [#allocation7], 4294966784  ;;  %v49_v0 = vld [vmem:[#allocation3] sm:$0xff]  ;;  %vm51_vm0 = vcmask 261120   ;;  %v71_v4 = vld [vmem:[#allocation6 + $0x10] sm:$0xff]  ;;  %v221_v7 = vmov 0  }
   0xc   :  { %v50_v1 = vmul.f32 %v49_v0, %v49_v0  ;;  %v72_v3 = vld [vmem:[#allocation6 + $0x18] sm:$0xff]  ;;  %v70_v5 = vld [vmem:[#allocation6 + $0x8] sm:$0xff]  ;;  %v69_v6 = vld [vmem:[#allocation6] sm:$0xff]  ;;  %135 = vset.pattern.permute.xlu0 %v221_v7  ;;  %vm66_vm2 = vcmask 7168   ;;  %s222_s24 = smov [#allocation8]   ;;  %s117_s28 = sshll.u32 %s258_s3, 4  ;;  %s118_s28 = int_to_ptr.hbm [resolvable:$true] %s117_s28 }
   0xd   :  { %89 = vmatpush.msra.mxu0 %v72_v3  ;;  %v136_v19 = vld [vmem:[%s257_s2] ss:$0 sm:$0xff]  ;;  %s115_s25 = sshll.u32 %s222_s24, 4  ;;  %s116_s25 = int_to_ptr.vmem [resolvable:$true] %s115_s25 }
   0xe   :  { %v52_v2 = vsel %vm51_vm0, %v50_v1, 0.0 }
   0xf   :  { %53 = vadd.xlane.f32.xlu0 %v52_v2  ;;  %90 = vmatpush.msra.mxu0 %v71_v4 }
  0x11   :  { %91 = vmatpush.msra.mxu0 %v70_v5 }
  0x13   :  { %92 = vmatpush.msra.mxu0 %v69_v6 }
  0x14   :  { %128 = vmatmul.msk.f32.vlgmr.msra.gmra.mxu0 %vm51_vm0, %v49_v0 }
  0x82   :  { %v54_v8 = vpop.xlane.xlu0 %53 }
  0x83   :  { %v55_v9 = vmax.f32 %v54_v8, 1e-24 }
  0x85   :  { %137 = vrsqrt.f32 %v55_v9  ;;  %vm62_vm3 = vweird.f32 %v55_v9 }
  0x8b   :  { %v138_v10 = vpop.eup %137 }
  0x8c   :  { %v57_v11 = vmul.f32 %v138_v10, %v55_v9  ;;  %vm63_vm1 = vweird.f32 %v138_v10 }
  0x8d   :  { %vm64_vm4 = vmor %vm62_vm3, %vm63_vm1 }
  0x8e   :  { %v58_v12 = vmul.f32 %v138_v10, %v57_v11 }
  0x90   :  { %v59_v13 = vmul.f32 0.5, %v58_v12 }
  0x91   :  { %v94_v18 = vpop.f32.mrf.mxu0 }
  0x92   :  { %v60_v14 = vsub.f32 1.5, %v59_v13 }
  0x94   :  { %v61_v15 = vmul.f32 %v138_v10, %v60_v14 }
  0x96   :  { %v65_v16 = vsel %vm64_vm4, %v138_v10, %v61_v15 }
  0x97   :  { %67 = vst.msk [vmem:[#allocation2] sm:$0xff] %vm66_vm2, %v65_v16 }
  0x9e   :  { %v97_v17 = vld [vmem:[#allocation2] sm:$0xff] }
  0x9f   :  { %100 = vperm.xlu0 %135, %v97_v17  }
 0x111   :  { %v101_v20 = vpop.permute.xlu0 %100 }
 0x112   :  { %v103_v21 = vmul.f32 %v101_v20, %v94_v18 }
 0x114   :  { %v108_v22 = vmul.f32 %v136_v19, %v103_v21 }
 0x116   :  { %109 = vst [vmem:[#allocation8] sm:$0xff] %v108_v22 }
 0x117   :  { %120 = dma.vmem_to_hbm [thread:$0]  %s116_s25, 128, %s118_s28, [#allocation5]  }
 0x118   :  { %215 = dma.done.wait [#allocation5], 128  }
 0x119   :  { %216 = vsyncadd [#allocation5], 4294967168 }
 0x11a   :  { %125 = vsyncpa [#allocation4], 1 }
 0x11b   :  { %126 = vsyncpa [#allocation7], 1 }
 0x11c   :  { %127 = vsyncpa [#allocation5], 1 }

</bundles_post_ra>
